<compile_context>
chip_gen: v5e
topology: v5e:2x2
jax: 0.10.0
libtpu: 0.0.40
codegen_flags: <defaults>
</compile_context>

<pallas_src>
import functools

import jax
import jax.numpy as jnp
import numpy as np
from jax.experimental import pallas as pl
from jax.experimental.pallas import tpu as pltpu


def _adaptive_bounds(in_size, out_size):
    """PyTorch AdaptiveMaxPool2d window bounds: [floor(i*I/O), ceil((i+1)*I/O))."""
    return [
        ((i * in_size) // out_size, -((-(i + 1) * in_size) // out_size))
        for i in range(out_size)
    ]


def _round_up(v, m):
    return ((v + m - 1) // m) * m


def _divisors_desc(v):
    return [d for d in range(v, 0, -1) if v % d == 0]


# ---------------------------------------------------------------------------
# Kernel
# ---------------------------------------------------------------------------
def _spp_kernel(x_ref, o_ref, *, out_side, H, W):
    """x_ref: (bT, cT, H, W) NCHW block; o_ref: (bT, cT, S) with S = sum(n*n)."""

    def direct_grid(n):
        # Exact AdaptiveMaxPool2d bounds.  Each H band is reduced once over sublanes and
        # reused for every W window of that row (slices, not sublane-regrouping reshapes).
        wb = _adaptive_bounds(W, n)
        grid = []
        for hs, he in _adaptive_bounds(H, n):
            band = jnp.max(x_ref[:, :, hs:he, :], axis=2)             # (bT, cT, W)
            grid.append([jnp.max(band[:, :, ws:we], axis=-1) for ws, we in wb])
        return grid                                                    # [n][n] of (bT, cT)

    def from_fine(fine, n, r):
        # Coarse cell (i, j) = max over the r x r finest cells it is the exact union of.
        grid = []
        for i in range(n):
            row = []
            for j in range(n):
                m = fine[i * r][j * r]
                for di in range(r):
                    for dj in range(r):
                        if di or dj:
                            m = jnp.maximum(m, fine[i * r + di][j * r + dj])
                row.append(m)
            grid.append(row)
        return grid

    n_f = max(out_side)
    hier_ok = (H % n_f == 0) and (W % n_f == 0)

    grids = {n_f: direct_grid(n_f)}            # single sweep at the finest granularity
    for n in sorted(set(out_side), reverse=True):
        if n in grids:
            continue
        if hier_ok and n_f % n == 0:
            grids[n] = from_fine(grids[n_f], n, n_f // n)
        else:
            grids[n] = direct_grid(n)          # exact adaptive bounds (non-divisible path)

    # One lane-stacked slab store per grid step, already in torch's (level, i, j) order.
    cells = []
    for n in out_side:
        g = grids[n]
        for i in range(n):
            cells.extend(g[i])
    o_ref[...] = jnp.stack(cells, axis=-1).astype(o_ref.dtype)         # (bT, cT, S)


# ---------------------------------------------------------------------------
# Tiling / wrapper
# ---------------------------------------------------------------------------
def _vmem_capacity_bytes():
    try:
        info = pltpu.get_tpu_info()
        cap = int(getattr(info, "vmem_capacity_bytes", 0) or 0)
        if cap > 0:
            return cap
    except Exception:
        pass
    return 64 * 1024 * 1024  # conservative default (v7x per-TensorCore VMEM)


def _choose_tiles(B, C, H, W, itemsize, budget_bytes):
    """Pick (bT, cT) so one padded (8,128)-tiled input block stays within budget_bytes."""
    sub = 8 * max(1, 4 // itemsize)            # sub-32-bit dtypes pack along sublanes
    plane = _round_up(H, sub) * _round_up(W, 128) * itemsize   # padded (H, W) VMEM plane

    # Output block puts cT in the second-to-last dim => cT must equal C or be a multiple of 8.
    c_cands = [d for d in _divisors_desc(C) if d == C or d % 8 == 0]
    cT = next((d for d in c_cands if d * plane <= budget_bytes), c_cands[-1])

    def fits(bt):
        return bt * cT * plane <= budget_bytes

    bT = next((d for d in _divisors_desc(B) if fits(d)), 1)
    # Prefer >=2 parallel grid steps when possible (v7x has two TensorCores).
    if (B // bT) * (C // cT) < 2 and B > 1:
        smaller = [d for d in _divisors_desc(B) if d < bT]
        if smaller:
            bT = smaller[0]
    return bT, cT, plane, sub


def spatial_pyramid_pool2d(x, out_side=(1, 2, 4)):
    """Forward of SpatialPyramidPool2D: NCHW input -> (B, C * sum(n*n)) in torch order."""
    B, C, H, W = x.shape
    out_side = tuple(int(n) for n in out_side)
    S = sum(n * n for n in out_side)
    itemsize = jnp.dtype(x.dtype).itemsize

    vmem_cap = _vmem_capacity_bytes()
    budget = min(4 * 1024 * 1024, vmem_cap // 16)   # ~1-4 MiB padded per input block
    bT, cT, plane, sub = _choose_tiles(B, C, H, W, itemsize, budget)

    in_block = bT * cT * plane
    out_block = bT * _round_up(cT, sub) * _round_up(S, 128) * itemsize
    vmem_limit = 2 * in_block + 2 * out_block + (6 << 20)  # double-buffered blocks + headroom
    vmem_limit = int(min(max(vmem_limit, 16 << 20), int(0.9 * vmem_cap)))

    kernel = functools.partial(_spp_kernel, out_side=out_side, H=H, W=W)

    cost = pl.CostEstimate(
        flops=2 * B * C * H * W,                                  # max-tree sweeps (advisory)
        transcendentals=0,
        bytes_accessed=B * C * H * W * itemsize + B * C * S * itemsize,
    )

    out = pl.pallas_call(
        kernel,
        out_shape=jax.ShapeDtypeStruct((B, C, S), x.dtype),
        grid=(B // bT, C // cT),
        in_specs=[pl.BlockSpec((bT, cT, H, W), lambda b, c: (b, c, 0, 0))],
        out_specs=pl.BlockSpec((bT, cT, S), lambda b, c: (b, c, 0)),
        compiler_params=pltpu.CompilerParams(
            dimension_semantics=("parallel", "parallel"),
            vmem_limit_bytes=vmem_limit,
        ),
        cost_estimate=cost,
    )(x)                                                          # (B, C, S)

    # torch flatten order: per level, (B, C, n, n).view(B, -1); concat over levels.  Each
    # slice is contiguous along the last axis, so this is cheap glue on a tiny output array.
    parts = []
    off = 0
    for n in out_side:
        parts.append(out[:, :, off:off + n * n].reshape(B, C * n * n))
        off += n * n
    return jnp.concatenate(parts, axis=1)


# ---------------------------------------------------------------------------
# Pure-JAX reference (identical AdaptiveMaxPool2d semantics) + self-test
# ---------------------------------------------------------------------------
def _spp_reference(x, out_side):
    B, C, H, W = x.shape
    outs = []
    for n in out_side:
        cells = []
        for hs, he in _adaptive_bounds(H, n):
            for ws, we in _adaptive_bounds(W, n):
                cells.append(jnp.max(x[:, :, hs:he, ws:we], axis=(2, 3)))  # (B, C)
        y = jnp.stack(cells, axis=-1).reshape(B, C, n, n)
        outs.append(y.reshape(B, -1))
    return jnp.concatenate(outs, axis=1)


if __name__ == "__main__":
    out_side = (1, 2, 4)  # pyramid levels (module __init__ arg)
    keys = jax.random.split(jax.random.PRNGKey(0), 3)

    # Primary example: NCHW (2, 4, 16, 16).
    x = jax.random.normal(keys[0], (2, 4, 16, 16), dtype=jnp.float32)
    out = jax.block_until_ready(spatial_pyramid_pool2d(x, out_side))
    assert out.shape == (2, 4 * sum(n * n for n in out_side)), out.shape
    np.testing.assert_allclose(
        np.asarray(out), np.asarray(_spp_reference(x, out_side)), rtol=0, atol=0
    )

    # Non-divisible spatial size exercises the exact adaptive-bounds path.
    x2 = jax.random.normal(keys[1], (2, 4, 10, 10), dtype=jnp.float32)
    out2 = jax.block_until_ready(spatial_pyramid_pool2d(x2, out_side))
    np.testing.assert_allclose(
        np.asarray(out2), np.asarray(_spp_reference(x2, out_side)), rtol=0, atol=0
    )

    # Larger channel count exercises channel tiling + hierarchical level reuse.
    x3 = jax.random.normal(keys[2], (1, 256, 12, 12), dtype=jnp.float32)
    out3 = jax.block_until_ready(spatial_pyramid_pool2d(x3, out_side))
    np.testing.assert_allclose(
        np.asarray(out3), np.asarray(_spp_reference(x3, out_side)), rtol=0, atol=0
    )

    print("KERNEL_OK")
</pallas_src>

<mosaic_0001>
module attributes {stable_mosaic.version = 11 : i64} {
  func.func @_spp_kernel(%arg0: i32, %arg1: i32, %arg2: memref<1x4x16x16xf32, #tpu.memory_space<vmem>>, %arg3: memref<1x4x21xf32, #tpu.memory_space<vmem>>) attributes {dimension_semantics = [#tpu.dimension_semantics<parallel>, #tpu.dimension_semantics<parallel>], iteration_bounds = array<i64: 2, 1>, scalar_prefetch = 0 : i64, scratch_operands = 0 : i64, tpu.core_type = #tpu.core_type<tc>, window_params = [{transform_indices = @transform_0, window_bounds = array<i64: 1, 4, 16, 16>}, {transform_indices = @transform_1, window_bounds = array<i64: 1, 4, 21>}]} {
    %c0 = arith.constant 0 : index
    %c0_0 = arith.constant 0 : index
    %c0_1 = arith.constant 0 : index
    %c0_2 = arith.constant 0 : index
    %0 = vector.load %arg2[%c0, %c0_0, %c0_1, %c0_2] : memref<1x4x16x16xf32, #tpu.memory_space<vmem>>, vector<1x4x4x16xf32>
    %cst = arith.constant dense<0xFF800000> : vector<1x4x16xf32>
    %1 = vector.multi_reduction <maximumf>, %0, %cst [2] : vector<1x4x4x16xf32> to vector<1x4x16xf32>
    %2 = vector.extract_strided_slice %1 {offsets = [0, 0, 0], sizes = [1, 4, 4], strides = [1, 1, 1]} : vector<1x4x16xf32> to vector<1x4x4xf32>
    %cst_3 = arith.constant dense<0xFF800000> : vector<1x4xf32>
    %3 = vector.multi_reduction <maximumf>, %2, %cst_3 [2] : vector<1x4x4xf32> to vector<1x4xf32>
    %4 = vector.extract_strided_slice %1 {offsets = [0, 0, 4], sizes = [1, 4, 4], strides = [1, 1, 1]} : vector<1x4x16xf32> to vector<1x4x4xf32>
    %cst_4 = arith.constant dense<0xFF800000> : vector<1x4xf32>
    %5 = vector.multi_reduction <maximumf>, %4, %cst_4 [2] : vector<1x4x4xf32> to vector<1x4xf32>
    %6 = vector.extract_strided_slice %1 {offsets = [0, 0, 8], sizes = [1, 4, 4], strides = [1, 1, 1]} : vector<1x4x16xf32> to vector<1x4x4xf32>
    %cst_5 = arith.constant dense<0xFF800000> : vector<1x4xf32>
    %7 = vector.multi_reduction <maximumf>, %6, %cst_5 [2] : vector<1x4x4xf32> to vector<1x4xf32>
    %8 = vector.extract_strided_slice %1 {offsets = [0, 0, 12], sizes = [1, 4, 4], strides = [1, 1, 1]} : vector<1x4x16xf32> to vector<1x4x4xf32>
    %cst_6 = arith.constant dense<0xFF800000> : vector<1x4xf32>
    %9 = vector.multi_reduction <maximumf>, %8, %cst_6 [2] : vector<1x4x4xf32> to vector<1x4xf32>
    %c0_7 = arith.constant 0 : index
    %c0_8 = arith.constant 0 : index
    %c4 = arith.constant 4 : index
    %c0_9 = arith.constant 0 : index
    %10 = vector.load %arg2[%c0_7, %c0_8, %c4, %c0_9] : memref<1x4x16x16xf32, #tpu.memory_space<vmem>>, vector<1x4x4x16xf32>
    %cst_10 = arith.constant dense<0xFF800000> : vector<1x4x16xf32>
    %11 = vector.multi_reduction <maximumf>, %10, %cst_10 [2] : vector<1x4x4x16xf32> to vector<1x4x16xf32>
    %12 = vector.extract_strided_slice %11 {offsets = [0, 0, 0], sizes = [1, 4, 4], strides = [1, 1, 1]} : vector<1x4x16xf32> to vector<1x4x4xf32>
    %cst_11 = arith.constant dense<0xFF800000> : vector<1x4xf32>
    %13 = vector.multi_reduction <maximumf>, %12, %cst_11 [2] : vector<1x4x4xf32> to vector<1x4xf32>
    %14 = vector.extract_strided_slice %11 {offsets = [0, 0, 4], sizes = [1, 4, 4], strides = [1, 1, 1]} : vector<1x4x16xf32> to vector<1x4x4xf32>
    %cst_12 = arith.constant dense<0xFF800000> : vector<1x4xf32>
    %15 = vector.multi_reduction <maximumf>, %14, %cst_12 [2] : vector<1x4x4xf32> to vector<1x4xf32>
    %16 = vector.extract_strided_slice %11 {offsets = [0, 0, 8], sizes = [1, 4, 4], strides = [1, 1, 1]} : vector<1x4x16xf32> to vector<1x4x4xf32>
    %cst_13 = arith.constant dense<0xFF800000> : vector<1x4xf32>
    %17 = vector.multi_reduction <maximumf>, %16, %cst_13 [2] : vector<1x4x4xf32> to vector<1x4xf32>
    %18 = vector.extract_strided_slice %11 {offsets = [0, 0, 12], sizes = [1, 4, 4], strides = [1, 1, 1]} : vector<1x4x16xf32> to vector<1x4x4xf32>
    %cst_14 = arith.constant dense<0xFF800000> : vector<1x4xf32>
    %19 = vector.multi_reduction <maximumf>, %18, %cst_14 [2] : vector<1x4x4xf32> to vector<1x4xf32>
    %c0_15 = arith.constant 0 : index
    %c0_16 = arith.constant 0 : index
    %c8 = arith.constant 8 : index
    %c0_17 = arith.constant 0 : index
    %20 = vector.load %arg2[%c0_15, %c0_16, %c8, %c0_17] : memref<1x4x16x16xf32, #tpu.memory_space<vmem>>, vector<1x4x4x16xf32>
    %cst_18 = arith.constant dense<0xFF800000> : vector<1x4x16xf32>
    %21 = vector.multi_reduction <maximumf>, %20, %cst_18 [2] : vector<1x4x4x16xf32> to vector<1x4x16xf32>
    %22 = vector.extract_strided_slice %21 {offsets = [0, 0, 0], sizes = [1, 4, 4], strides = [1, 1, 1]} : vector<1x4x16xf32> to vector<1x4x4xf32>
    %cst_19 = arith.constant dense<0xFF800000> : vector<1x4xf32>
    %23 = vector.multi_reduction <maximumf>, %22, %cst_19 [2] : vector<1x4x4xf32> to vector<1x4xf32>
    %24 = vector.extract_strided_slice %21 {offsets = [0, 0, 4], sizes = [1, 4, 4], strides = [1, 1, 1]} : vector<1x4x16xf32> to vector<1x4x4xf32>
    %cst_20 = arith.constant dense<0xFF800000> : vector<1x4xf32>
    %25 = vector.multi_reduction <maximumf>, %24, %cst_20 [2] : vector<1x4x4xf32> to vector<1x4xf32>
    %26 = vector.extract_strided_slice %21 {offsets = [0, 0, 8], sizes = [1, 4, 4], strides = [1, 1, 1]} : vector<1x4x16xf32> to vector<1x4x4xf32>
    %cst_21 = arith.constant dense<0xFF800000> : vector<1x4xf32>
    %27 = vector.multi_reduction <maximumf>, %26, %cst_21 [2] : vector<1x4x4xf32> to vector<1x4xf32>
    %28 = vector.extract_strided_slice %21 {offsets = [0, 0, 12], sizes = [1, 4, 4], strides = [1, 1, 1]} : vector<1x4x16xf32> to vector<1x4x4xf32>
    %cst_22 = arith.constant dense<0xFF800000> : vector<1x4xf32>
    %29 = vector.multi_reduction <maximumf>, %28, %cst_22 [2] : vector<1x4x4xf32> to vector<1x4xf32>
    %c0_23 = arith.constant 0 : index
    %c0_24 = arith.constant 0 : index
    %c12 = arith.constant 12 : index
    %c0_25 = arith.constant 0 : index
    %30 = vector.load %arg2[%c0_23, %c0_24, %c12, %c0_25] : memref<1x4x16x16xf32, #tpu.memory_space<vmem>>, vector<1x4x4x16xf32>
    %cst_26 = arith.constant dense<0xFF800000> : vector<1x4x16xf32>
    %31 = vector.multi_reduction <maximumf>, %30, %cst_26 [2] : vector<1x4x4x16xf32> to vector<1x4x16xf32>
    %32 = vector.extract_strided_slice %31 {offsets = [0, 0, 0], sizes = [1, 4, 4], strides = [1, 1, 1]} : vector<1x4x16xf32> to vector<1x4x4xf32>
    %cst_27 = arith.constant dense<0xFF800000> : vector<1x4xf32>
    %33 = vector.multi_reduction <maximumf>, %32, %cst_27 [2] : vector<1x4x4xf32> to vector<1x4xf32>
    %34 = vector.extract_strided_slice %31 {offsets = [0, 0, 4], sizes = [1, 4, 4], strides = [1, 1, 1]} : vector<1x4x16xf32> to vector<1x4x4xf32>
    %cst_28 = arith.constant dense<0xFF800000> : vector<1x4xf32>
    %35 = vector.multi_reduction <maximumf>, %34, %cst_28 [2] : vector<1x4x4xf32> to vector<1x4xf32>
    %36 = vector.extract_strided_slice %31 {offsets = [0, 0, 8], sizes = [1, 4, 4], strides = [1, 1, 1]} : vector<1x4x16xf32> to vector<1x4x4xf32>
    %cst_29 = arith.constant dense<0xFF800000> : vector<1x4xf32>
    %37 = vector.multi_reduction <maximumf>, %36, %cst_29 [2] : vector<1x4x4xf32> to vector<1x4xf32>
    %38 = vector.extract_strided_slice %31 {offsets = [0, 0, 12], sizes = [1, 4, 4], strides = [1, 1, 1]} : vector<1x4x16xf32> to vector<1x4x4xf32>
    %cst_30 = arith.constant dense<0xFF800000> : vector<1x4xf32>
    %39 = vector.multi_reduction <maximumf>, %38, %cst_30 [2] : vector<1x4x4xf32> to vector<1x4xf32>
    %40 = arith.maximumf %3, %5 : vector<1x4xf32>
    %41 = arith.maximumf %40, %13 : vector<1x4xf32>
    %42 = arith.maximumf %41, %15 : vector<1x4xf32>
    %43 = arith.maximumf %7, %9 : vector<1x4xf32>
    %44 = arith.maximumf %43, %17 : vector<1x4xf32>
    %45 = arith.maximumf %44, %19 : vector<1x4xf32>
    %46 = arith.maximumf %23, %25 : vector<1x4xf32>
    %47 = arith.maximumf %46, %33 : vector<1x4xf32>
    %48 = arith.maximumf %47, %35 : vector<1x4xf32>
    %49 = arith.maximumf %27, %29 : vector<1x4xf32>
    %50 = arith.maximumf %49, %37 : vector<1x4xf32>
    %51 = arith.maximumf %50, %39 : vector<1x4xf32>
    %52 = arith.maximumf %3, %5 : vector<1x4xf32>
    %53 = arith.maximumf %52, %7 : vector<1x4xf32>
    %54 = arith.maximumf %53, %9 : vector<1x4xf32>
    %55 = arith.maximumf %54, %13 : vector<1x4xf32>
    %56 = arith.maximumf %55, %15 : vector<1x4xf32>
    %57 = arith.maximumf %56, %17 : vector<1x4xf32>
    %58 = arith.maximumf %57, %19 : vector<1x4xf32>
    %59 = arith.maximumf %58, %23 : vector<1x4xf32>
    %60 = arith.maximumf %59, %25 : vector<1x4xf32>
    %61 = arith.maximumf %60, %27 : vector<1x4xf32>
    %62 = arith.maximumf %61, %29 : vector<1x4xf32>
    %63 = arith.maximumf %62, %33 : vector<1x4xf32>
    %64 = arith.maximumf %63, %35 : vector<1x4xf32>
    %65 = arith.maximumf %64, %37 : vector<1x4xf32>
    %66 = arith.maximumf %65, %39 : vector<1x4xf32>
    %67 = vector.shape_cast %66 : vector<1x4xf32> to vector<1x4x1xf32>
    %68 = vector.shape_cast %42 : vector<1x4xf32> to vector<1x4x1xf32>
    %69 = vector.shape_cast %45 : vector<1x4xf32> to vector<1x4x1xf32>
    %70 = vector.shape_cast %48 : vector<1x4xf32> to vector<1x4x1xf32>
    %71 = vector.shape_cast %51 : vector<1x4xf32> to vector<1x4x1xf32>
    %72 = vector.shape_cast %3 : vector<1x4xf32> to vector<1x4x1xf32>
    %73 = vector.shape_cast %5 : vector<1x4xf32> to vector<1x4x1xf32>
    %74 = vector.shape_cast %7 : vector<1x4xf32> to vector<1x4x1xf32>
    %75 = vector.shape_cast %9 : vector<1x4xf32> to vector<1x4x1xf32>
    %76 = vector.shape_cast %13 : vector<1x4xf32> to vector<1x4x1xf32>
    %77 = vector.shape_cast %15 : vector<1x4xf32> to vector<1x4x1xf32>
    %78 = vector.shape_cast %17 : vector<1x4xf32> to vector<1x4x1xf32>
    %79 = vector.shape_cast %19 : vector<1x4xf32> to vector<1x4x1xf32>
    %80 = vector.shape_cast %23 : vector<1x4xf32> to vector<1x4x1xf32>
    %81 = vector.shape_cast %25 : vector<1x4xf32> to vector<1x4x1xf32>
    %82 = vector.shape_cast %27 : vector<1x4xf32> to vector<1x4x1xf32>
    %83 = vector.shape_cast %29 : vector<1x4xf32> to vector<1x4x1xf32>
    %84 = vector.shape_cast %33 : vector<1x4xf32> to vector<1x4x1xf32>
    %85 = vector.shape_cast %35 : vector<1x4xf32> to vector<1x4x1xf32>
    %86 = vector.shape_cast %37 : vector<1x4xf32> to vector<1x4x1xf32>
    %87 = vector.shape_cast %39 : vector<1x4xf32> to vector<1x4x1xf32>
    %88 = tpu.concatenate %67, %68, %69, %70, %71, %72, %73, %74, %75, %76, %77, %78, %79, %80, %81, %82 in 2 : vector<1x4x1xf32>, vector<1x4x1xf32>, vector<1x4x1xf32>, vector<1x4x1xf32>, vector<1x4x1xf32>, vector<1x4x1xf32>, vector<1x4x1xf32>, vector<1x4x1xf32>, vector<1x4x1xf32>, vector<1x4x1xf32>, vector<1x4x1xf32>, vector<1x4x1xf32>, vector<1x4x1xf32>, vector<1x4x1xf32>, vector<1x4x1xf32>, vector<1x4x1xf32> -> vector<1x4x16xf32>
    %89 = tpu.concatenate %83, %84, %85, %86, %87 in 2 : vector<1x4x1xf32>, vector<1x4x1xf32>, vector<1x4x1xf32>, vector<1x4x1xf32>, vector<1x4x1xf32> -> vector<1x4x5xf32>
    %90 = tpu.concatenate %88, %89 in 2 : vector<1x4x16xf32>, vector<1x4x5xf32> -> vector<1x4x21xf32>
    %c0_31 = arith.constant 0 : index
    %c0_32 = arith.constant 0 : index
    %c0_33 = arith.constant 0 : index
    %91 = vector.load %arg3[%c0_31, %c0_32, %c0_33] : memref<1x4x21xf32, #tpu.memory_space<vmem>>, vector<1x4x21xf32>
    tpu.vector_store %arg3[%c0_31, %c0_32, %c0_33], %90 {strides = array<i32>} : memref<1x4x21xf32, #tpu.memory_space<vmem>>, vector<1x4x21xf32>,
    return
  }
  func.func @transform_0(%arg0: i32, %arg1: i32) -> (i32, i32, i32, i32) {
    %c0_i32 = arith.constant 0 : i32
    %c0_i32_0 = arith.constant 0 : i32
    %c0_i32_1 = arith.constant 0 : i32
    return %arg0, %arg1, %c0_i32, %c0_i32_0 : i32, i32, i32, i32
  }
  func.func @transform_1(%arg0: i32, %arg1: i32) -> (i32, i32, i32) {
    %c0_i32 = arith.constant 0 : i32
    %c0_i32_0 = arith.constant 0 : i32
    return %arg0, %arg1, %c0_i32 : i32, i32, i32
  }
}

</mosaic_0001>

<bundles_post_ra>
// kernel: tpu_custom_call.1
= control target key start
LH: loop header
LB: loop body
LE: loop exit
PB: predicated region body
PF: predicated region fallthrough
CT: control target
= control target key end

     0   :  { %6 = vsyncpa [#allocation3], 0  ;;  %s944_s0 = inlined_call_operand.hbm [shape: f32[2,4,16,16], index: 0, kind: input, shape index: {}]   ;;  %s945_s1 = inlined_call_operand.hbm [shape: f32[2,4,21], index: 1, kind: output, shape index: {}]  }
   0x1   :  { %8 = vsyncpa [#allocation3 + $0x1], 0 }
   0x2   :  { %9 = vsyncpa [#allocation4], 0 }
   0x3   :  { %11 = vsyncpa [#allocation4 + $0x1], 0  ;;  %s747_s6 = smov 0   ;;  %s749_s7 = smov 0  }
   0x4   :  { %s751_s8 = smov 0   ;;  %s753_s9 = smov 0  }
   0x5   :  { %s755_s10 = smov 0   ;;  %s757_s11 = smov 0  }
   0x6 LB: > { %s540_s12 = sadd.s32 4294967295, %s732_s11   ;;  %s541_s13 = sadd.s32 4294967294, %s732_s11   ;;  %s732_s11 = sphi %s757_s11, %s17_s11   ;;  %s728_s10 = sphi %s755_s10, %s954_s10   ;;  %s724_s9 = sphi %s753_s9, %s953_s9   ;;  %s720_s8 = sphi %s751_s8, %s952_s8   ;;  %s716_s7 = sphi %s749_s7, %s951_s7   ;;  %s712_s6 = sphi %s747_s6, %s950_s6  }
   0x7   : > { %s29_s14 = sadd.s32 1, %s728_s10  ;;  %s38_s15 = sadd.s32 1, %s720_s8 }
   0x8   : > { %p31_p0 = scmp.ge.s32.totalorder %s29_s14, 2  ;;  %p45_p1 = scmp.ne.s32.totalorder %s720_s8, %s716_s7 }
   0x9   : > { %p46_p2 = scmp.eq.s32.totalorder %s732_s11, 0  ;;  %p51_p3 = scmp.ne.s32.totalorder %s716_s7, %s712_s6 }
   0xa   : > { %s956_s14 = smov (%p31_p0, %s29_s14), 0  ;;  %p52_p5 = scmp.eq.s32.totalorder %s540_s12, 0 }
   0xb   : > { %p788_p4 = por %p46_p2, %p45_p1  ;;  %s33_s17 = ssub.s32 %s728_s10, %s956_s14 }
   0xc   : > { %p77_p6 = scmp.eq.s32.totalorder %s540_s12, 1  ;;  %p36_p7 = scmp.eq.s32.totalorder %s33_s17, 0 }
   0xd   : > { %p794_p8 = por %p52_p5, %p51_p3  ;;  %p83_p10 = scmp.eq.s32.totalorder %s541_s13, 1 }
   0xe   : > { %p798_p9 = por %p77_p6, %p45_p1  ;;  %p543_p12 = scmp.ge.s32.totalorder %s732_s11, 2 }
   0xf   : > { %s803_s20 = scalar_select %p36_p7, %s720_s8, %s38_s15  }
  0x10   : > { %p805_p11 = por %p83_p10, %p51_p3  ;;  %p567_p13 = scmp.lt.s32.totalorder %s732_s11, 2 }
  0x11   : > { %s103_s22 = sand.u32 1, %s720_s8   ;;  %s554_s24 = sshll.u32 %s728_s10, 6 }
  0x12   : > { %s544_s23 = sshll.u32 %s103_s22, 6  ;;  %s115_s27 = scalar_lea.hbm %s944_s0, %s554_s24 }
  0x13   : > { %s107_s28 = scalar_lea.vmem [#allocation2], %s544_s23  ;;  %s116_s30 = sshll.u32 %s115_s27, 4  ;;  %s117_s30 = int_to_ptr.hbm [resolvable:$true] %s116_s30 }
  0x14   : > { %s118_s29 = sshll.u32 %s107_s28, 4  ;;  %p560_p0 = pnand %p567_p13, %p788_p4  ;;  %s119_s29 = int_to_ptr.vmem [resolvable:$true] %s118_s29 }
  0x15   : > { %p547_p1 = scmp.ge.s32.totalorder %s732_s11, 1  ;;  %s104_s2 = scalar_lea.sflag [#allocation3], %s103_s22 }
  0x16   : > { %s734_s3 = smov 128   ;;  %s735_s4 = smov 8  }
  0x17   : > { %562 = dma.hbm_to_vmem [thread:$0]  (!%p560_p0), %s117_s30, 1024, %s119_s29, %s104_s2, %s734_s3, %s734_s3, %s735_s4  }
  0x18   : > { %p126_p2 = scmp.lt.s32.totalorder %s732_s11, 3 }
  0x1a   : > { %p127_p3 = pnand %p547_p1, %p126_p2 }
  0x1b   : > { %s821_s5 = sand.u32 (!%p127_p3), 1, %s716_s7  }
  0x1c   : > { %130 = sbr.rel (%p127_p3) target bundleno = 315 (0x13b), region = 24  ;;  %s548_s12 = sshll.u32 (!%p127_p3), %s821_s5, 6 }
  0x1d   : > { %s133_s13 = scalar_lea.sflag (!%p127_p3), [#allocation3], %s821_s5  ;;  %s825_s15 = scalar_lea.vmem (!%p127_p3), [#allocation2], %s548_s12 }
  0x21   : > { %703 = dma.done.wait (%p794_p8), %s133_s13, 1024  }
  0x22   : > { %705 = vsyncadd (%p794_p8), %s133_s13, 4294966272  ;;  %vm161_vm0 = vcmask 125952   ;;  %v321_v0 = vld [vmem:[%s825_s15 + $0xc] sm:$0xf]  ;;  %v322_v1 = vld [vmem:[%s825_s15 + $0x1c] sm:$0xf] }
  0x23   : > { %v323_v2 = vld [vmem:[%s825_s15 + $0x2c] sm:$0xf]  ;;  %v324_v3 = vld [vmem:[%s825_s15 + $0x3c] sm:$0xf]  ;;  %v325_v4 = vsel %vm161_vm0, %v321_v0, -inf  ;;  %v332_v5 = vsel %vm161_vm0, %v322_v1, -inf }
  0x24   : > { %v339_v6 = vsel %vm161_vm0, %v323_v2, -inf  ;;  %v326_v7 = vrot.slane %v325_v4, 4  ;;  %v333_v8 = vrot.slane %v332_v5, 4  ;;  %v346_v10 = vsel %vm161_vm0, %v324_v3, -inf  ;;  %v157_v11 = vld [vmem:[%s825_s15] sm:$0xf] }
  0x25   : > { %v340_v9 = vrot.slane %v339_v6, 4  ;;  %vm194_vm1 = vcmask 1041409   ;;  %v347_v12 = vrot.slane %v346_v10, 4  ;;  %v158_v13 = vld [vmem:[%s825_s15 + $0x10] sm:$0xf]  ;;  %v162_v15 = vsel %vm161_vm0, %v157_v11, -inf }
  0x26   : > { %v159_v14 = vld [vmem:[%s825_s15 + $0x20] sm:$0xf]  ;;  %vm196_vm2 = vcmask 1042434   ;;  %v327_v16 = vmax.f32 %v325_v4, %v326_v7  ;;  %v334_v17 = vmax.f32 %v332_v5, %v333_v8  ;;  %v160_v19 = vld [vmem:[%s825_s15 + $0x30] sm:$0xf]  ;;  %v163_v20 = vrot.slane %v162_v15, 4 }
  0x27   : > { %v341_v18 = vmax.f32 %v339_v6, %v340_v9  ;;  %vm198_vm3 = vcmask 1043459   ;;  %v348_v21 = vmax.f32 %v346_v10, %v347_v12  ;;  %v169_v22 = vsel %vm161_vm0, %v158_v13, -inf  ;;  %v269_v45 = vld [vmem:[%s825_s15 + $0x8] sm:$0xf]  ;;  %v270_v50 = vld [vmem:[%s825_s15 + $0x18] sm:$0xf] }
  0x28   : > { %v176_v23 = vsel %vm161_vm0, %v159_v14, -inf  ;;  %v183_v24 = vsel %vm161_vm0, %v160_v19, -inf  ;;  %vm201_vm4 = vcmask 27648   ;;  %v328_v25 = vrot.slane %v327_v16, 2  ;;  %v271_v59 = vld [vmem:[%s825_s15 + $0x28] sm:$0xf] }
  0x29   : > { %v335_v26 = vrot.slane %v334_v17, 2  ;;  %v342_v27 = vrot.slane %v341_v18, 2  ;;  %v164_v28 = vmax.f32 %v162_v15, %v163_v20  ;;  %v349_v29 = vrot.slane %v348_v21, 2  ;;  %v272_v5 = vld [vmem:[%s825_s15 + $0x38] sm:$0xf]  ;;  %s736_s16 = smov 16  }
  0x2a   : > { %v170_v30 = vrot.slane %v169_v22, 4  ;;  %v177_v31 = vrot.slane %v176_v23, 4  ;;  %v184_v32 = vrot.slane %v183_v24, 4  ;;  %v329_v33 = vmax.f32 %v327_v16, %v328_v25  ;;  %v217_v16 = vld [vmem:[%s825_s15 + $0x4] sm:$0xf]  ;;  %s549_s17 = sshll.u32 %s821_s5, 2 }
  0x2b   : > { %v336_v34 = vmax.f32 %v334_v17, %v335_v26  ;;  %v343_v35 = vmax.f32 %v341_v18, %v342_v27  ;;  %v165_v36 = vrot.slane %v164_v28, 2  ;;  %v350_v37 = vmax.f32 %v348_v21, %v349_v29  ;;  %v218_v17 = vld [vmem:[%s825_s15 + $0x14] sm:$0xf]  ;;  %s551_s18 = sshll.u32 %s724_s9, 2  ;;  %s155_s25 = scalar_lea.vmem [#allocation5], %s549_s17 }
  0x2c   : > { %v171_v38 = vmax.f32 %v169_v22, %v170_v30  ;;  %v178_v39 = vmax.f32 %v176_v23, %v177_v31  ;;  %v185_v40 = vmax.f32 %v183_v24, %v184_v32  ;;  %v330_v41 = vrot.slane %v329_v33, 1  ;;  %v219_v32 = vld [vmem:[%s825_s15 + $0x24] sm:$0xf]  ;;  %s453_s24 = scalar_lea.hbm %s945_s1, %s551_s18  ;;  %s455_s26 = sshll.u32 %s155_s25, 4  ;;  %s456_s26 = int_to_ptr.vmem [resolvable:$true] %s455_s26 }
  0x2d   : > { %v337_v42 = vrot.slane %v336_v34, 1  ;;  %v344_v43 = vrot.slane %v343_v35, 1  ;;  %v166_v44 = vmax.f32 %v164_v28, %v165_v36  ;;  %v351_v46 = vrot.slane %v350_v37, 1  ;;  %s457_s27 = sshll.u32 %s453_s24, 4  ;;  %s442_s9 = scalar_lea.sflag [#allocation4], %s821_s5  ;;  %s458_s27 = int_to_ptr.hbm [resolvable:$true] %s457_s27 }
  0x2e   : > { %v172_v47 = vrot.slane %v171_v38, 2  ;;  %v179_v48 = vrot.slane %v178_v39, 2  ;;  %v186_v49 = vrot.slane %v185_v40, 2  ;;  %v331_v51 = vmax.f32 %v329_v33, %v330_v41  ;;  %v220_v33 = vld [vmem:[%s825_s15 + $0x34] sm:$0xf]  ;;  %s664_s28 = sshra.s32 %s458_s27, 4  ;;  %s665_s28 = int_to_ptr.hbm [resolvable:$true] %s664_s28 }
  0x2f   : > { %v338_v52 = vmax.f32 %v336_v34, %v337_v42  ;;  %v345_v53 = vmax.f32 %v343_v35, %v344_v43  ;;  %v167_v54 = vrot.slane %v166_v44, 1  ;;  %v352_v55 = vmax.f32 %v350_v37, %v351_v46  ;;  %s666_s29 = scalar_lea.hbm %s665_s28, 4  ;;  %s670_s3 = scalar_lea.hbm %s945_s1, 8 }
  0x30   : > { %v173_v56 = vmax.f32 %v171_v38, %v172_v47  ;;  %v180_v57 = vmax.f32 %v178_v39, %v179_v48  ;;  %v187_v58 = vmax.f32 %v185_v40, %v186_v49  ;;  %v273_v62 = vsel %vm161_vm0, %v269_v45, -inf  ;;  %p667_p4 = scmp.ne.s32.totalorder %s665_s28, %s666_s29  ;;  %p671_p7 = scmp.lt.s32.totalorder %s665_s28, %s945_s1 }
  0x31   : > { %v357_v60 = vsel %vm194_vm1, %v338_v52, %v331_v51  ;;  %v168_v61 = vmax.f32 %v166_v44, %v167_v54  ;;  %v280_v63 = vsel %vm161_vm0, %v270_v50, -inf  ;;  %v274_v6 = vrot.slane %v273_v62, 4  ;;  %p672_p8 = scmp.lt.s32.totalorder %s670_s3, %s666_s29 }
  0x32   : > { %v358_v0 = vsel %vm196_vm2, %v345_v53, %v357_v60  ;;  %v174_v1 = vrot.slane %v173_v56, 1  ;;  %v181_v2 = vrot.slane %v180_v57, 1  ;;  %v188_v3 = vrot.slane %v187_v58, 1  ;;  %p668_p5 = pnand %p667_p4, %p798_p9 }
  0x33   : > { %v855_v4 = vsel %vm198_vm3, %v352_v55, %v358_v0  ;;  %v281_v7 = vrot.slane %v280_v63, 4  ;;  %v287_v8 = vsel %vm161_vm0, %v271_v59, -inf  ;;  %v275_v13 = vmax.f32 %v273_v62, %v274_v6  ;;  %p673_p10 = por %p672_p8, %p671_p7 }
  0x34   : > { %v361_v9 = vsel %vm201_vm4, %v855_v4, -inf  ;;  %v175_v10 = vmax.f32 %v173_v56, %v174_v1  ;;  %v182_v11 = vmax.f32 %v180_v57, %v181_v2  ;;  %v189_v12 = vmax.f32 %v187_v58, %v188_v3  ;;  %p669_p6 = pneg %p668_p5 }
  0x35   : > { %362 = vmax.xlane.f32.xlu2 %v361_v9  ;;  %v282_v14 = vmax.f32 %v280_v63, %v281_v7  ;;  %v288_v15 = vrot.slane %v287_v8, 4  ;;  %vm209_vm5 = vcmask 93248   ;;  %vm205_vm6 = vcmask 60448  }
  0x36   : > { %v195_v18 = vsel %vm194_vm1, %v175_v10, %v168_v61  ;;  %v294_v19 = vsel %vm161_vm0, %v272_v5, -inf  ;;  %v276_v21 = vrot.slane %v275_v13, 2  ;;  %v221_v26 = vsel %vm161_vm0, %v217_v16, -inf  ;;  %p674_p13 = pnand %p673_p10, %p669_p6 }
  0x37   : > { %v197_v20 = vsel %vm196_vm2, %v182_v11, %v195_v18  ;;  %v283_v22 = vrot.slane %v282_v14, 2  ;;  %v289_v23 = vmax.f32 %v287_v8, %v288_v15  ;;  %v295_v25 = vrot.slane %v294_v19, 4 }
  0x38   : > { %v199_v24 = vsel %vm198_vm3, %v189_v12, %v197_v20  ;;  %v228_v27 = vsel %vm161_vm0, %v218_v17, -inf  ;;  %v277_v30 = vmax.f32 %v275_v13, %v276_v21  ;;  %v364_v34 = vsel %vm205_vm6, %v855_v4, -inf }
  0x39   : > { %v210_v28 = vsel %vm209_vm5, %v199_v24, -inf  ;;  %v202_v29 = vsel %vm201_vm4, %v199_v24, -inf  ;;  %v284_v31 = vmax.f32 %v282_v14, %v283_v22  ;;  %vm213_vm7 = vcmask 126048  }
  0x3a   : > { %211 = vmax.xlane.f32.xlu1 %v210_v28  ;;  %203 = vmax.xlane.f32.xlu0 %v202_v29  ;;  %v290_v35 = vrot.slane %v289_v23, 2  ;;  %v296_v36 = vmax.f32 %v294_v19, %v295_v25  ;;  %v278_v37 = vrot.slane %v277_v30, 1  ;;  %v222_v39 = vrot.slane %v221_v26, 4 }
  0x3b   : > { %v285_v38 = vrot.slane %v284_v31, 1  ;;  %v229_v40 = vrot.slane %v228_v27, 4  ;;  %v235_v43 = vsel %vm161_vm0, %v219_v32, -inf  ;;  %v242_v44 = vsel %vm161_vm0, %v220_v33, -inf }
  0x3c   : > { %v291_v41 = vmax.f32 %v289_v23, %v290_v35  ;;  %v297_v42 = vrot.slane %v296_v36, 2  ;;  %v279_v45 = vmax.f32 %v277_v30, %v278_v37  ;;  %v223_v47 = vmax.f32 %v221_v26, %v222_v39 }
  0x3d   : > { %365 = vmax.xlane.f32.xlu2 %v364_v34  ;;  %v286_v46 = vmax.f32 %v284_v31, %v285_v38  ;;  %v230_v48 = vmax.f32 %v228_v27, %v229_v40  ;;  %v236_v51 = vrot.slane %v235_v43, 4  ;;  %v243_v52 = vrot.slane %v242_v44, 4 }
  0x3e   : > { %v292_v49 = vrot.slane %v291_v41, 1  ;;  %v298_v50 = vmax.f32 %v296_v36, %v297_v42  ;;  %v206_v54 = vsel %vm205_vm6, %v199_v24, -inf  ;;  %v224_v55 = vrot.slane %v223_v47, 2 }
  0x3f   : > { %v305_v53 = vsel %vm194_vm1, %v286_v46, %v279_v45  ;;  %v231_v56 = vrot.slane %v230_v48, 2  ;;  %v237_v59 = vmax.f32 %v235_v43, %v236_v51  ;;  %v244_v60 = vmax.f32 %v242_v44, %v243_v52 }
  0x40   : > { %v293_v57 = vmax.f32 %v291_v41, %v292_v49  ;;  %v299_v58 = vrot.slane %v298_v50, 1  ;;  %v370_v61 = vsel %vm213_vm7, %v855_v4, -inf  ;;  %v225_v62 = vmax.f32 %v223_v47, %v224_v55 }
  0x41   : > { %v232_v63 = vmax.f32 %v230_v48, %v231_v56  ;;  %v238_v2 = vrot.slane %v237_v59, 2  ;;  %v245_v3 = vrot.slane %v244_v60, 2  ;;  %v214_v15 = vsel %vm213_vm7, %v199_v24, -inf }
  0x42   : > { %v300_v0 = vmax.f32 %v298_v50, %v299_v58  ;;  %v306_v1 = vsel %vm196_vm2, %v293_v57, %v305_v53  ;;  %207 = vmax.xlane.f32.xlu0 %v206_v54  ;;  %v226_v5 = vrot.slane %v225_v62, 1  ;;  %v367_v20 = vsel %vm209_vm5, %v855_v4, -inf }
  0x43   : > { %v233_v6 = vrot.slane %v232_v63, 1  ;;  %v239_v8 = vmax.f32 %v237_v59, %v238_v2  ;;  %v246_v9 = vmax.f32 %v244_v60, %v245_v3  ;;  %vm399_vm8 = vcmask 7168  }
  0x44   : > { %v307_v7 = vsel %vm198_vm3, %v300_v0, %v306_v1  ;;  %v227_v11 = vmax.f32 %v225_v62, %v226_v5  ;;  %vm401_vm9 = vcmask 15360   ;;  %vm403_vm10 = vcmask 23552  }
  0x45   : > { %v318_v10 = vsel %vm213_vm7, %v307_v7, -inf  ;;  %371 = vmax.xlane.f32.xlu2 %v370_v61  ;;  %v234_v12 = vmax.f32 %v232_v63, %v233_v6  ;;  %v240_v13 = vrot.slane %v239_v8, 1  ;;  %v247_v14 = vrot.slane %v246_v9, 1 }
  0x46   : > { %319 = vmax.xlane.f32.xlu1 %v318_v10  ;;  %v312_v24 = vsel %vm205_vm6, %v307_v7, -inf  ;;  %v309_v4 = vsel %vm201_vm4, %v307_v7, -inf  ;;  %v315_v27 = vsel %vm209_vm5, %v307_v7, -inf  ;;  %vm405_vm11 = vcmask 31744  }
  0x47   : > { %v253_v16 = vsel %vm194_vm1, %v234_v12, %v227_v11  ;;  %v241_v17 = vmax.f32 %v239_v8, %v240_v13  ;;  %v248_v18 = vmax.f32 %v246_v9, %v247_v14  ;;  %vm407_vm12 = vcmask 39936  }
  0x48   : > { %vm409_vm13 = vcmask 48128   ;;  %vm411_vm14 = vcmask 56320   ;;  %vm413_vm15 = vcmask 64512   ;;  %vm415_vm0 = vcmask 72704  }
  0x49   : > { %v254_v19 = vsel %vm196_vm2, %v241_v17, %v253_v16  ;;  %vm417_vm1 = vcmask 80896   ;;  %vm419_vm2 = vcmask 89088  }
  0x4a   : > { %215 = vmax.xlane.f32.xlu0 %v214_v15  ;;  %v255_v21 = vsel %vm198_vm3, %v248_v18, %v254_v19  ;;  %vm421_vm3 = vcmask 97280  }
  0x4b   : > { %v263_v22 = vsel %vm209_vm5, %v255_v21, -inf  ;;  %v257_v23 = vsel %vm201_vm4, %v255_v21, -inf  ;;  %v260_v25 = vsel %vm205_vm6, %v255_v21, -inf  ;;  %v266_v26 = vsel %vm213_vm7, %v255_v21, -inf }
  0x4c   : > { %vm423_vm4 = vcmask 105472   ;;  %vm425_vm5 = vcmask 113664   ;;  %vm427_vm6 = vcmask 121856   ;;  %vm437_vm7 = vcmask 130048  }
  0x4d   : > { %264 = vmax.xlane.f32.xlu2 %v263_v22 }
  0x4e   : > { %368 = vmax.xlane.f32.xlu1 %v367_v20 }
  0x52   : > { %258 = vmax.xlane.f32.xlu0 %v257_v23 }
  0x55   : > { %313 = vmax.xlane.f32.xlu2 %v312_v24 }
  0x56   : > { %261 = vmax.xlane.f32.xlu1 %v260_v25 }
  0x5a   : > { %267 = vmax.xlane.f32.xlu0 %v266_v26 }
  0x5e   : > { %310 = vmax.xlane.f32.xlu1 %v309_v4 }
  0x62   : > { %316 = vmax.xlane.f32.xlu0 %v315_v27 }
  0xa8   : > { %v363_v28 = vpop.xlane.xlu2 %362 }
  0xad   : > { %v204_v29 = vpop.xlane.xlu0 %203  ;;  %v212_v30 = vpop.xlane.xlu1 %211 }
  0xb0   : > { %v366_v31 = vpop.xlane.xlu2 %365 }
  0xb5   : > { %v208_v32 = vpop.xlane.xlu0 %207 }
  0xb6   : > { %v373_v37 = vmax.f32 %v204_v29, %v208_v32 }
  0xb8   : > { %v372_v34 = vpop.xlane.xlu2 %371  ;;  %v385_v40 = vmax.f32 %v373_v37, %v212_v30 }
  0xb9   : > { %v320_v33 = vpop.xlane.xlu1 %319 }
  0xba   : > { %v429_v36 = vsel %vm399_vm8, %v320_v33, %v363_v28 }
  0xbb   : > { %v430_v38 = vsel %vm401_vm9, %v429_v36, %v366_v31 }
  0xbd   : > { %v216_v35 = vpop.xlane.xlu0 %215 }
  0xbe   : > { %v386_v43 = vmax.f32 %v385_v40, %v216_v35  ;;  %v376_v5 = vmax.f32 %v212_v30, %v216_v35 }
  0xc0   : > { %v265_v44 = vpop.xlane.xlu2 %264 }
  0xc1   : > { %v369_v39 = vpop.xlane.xlu1 %368  ;;  %v377_v8 = vmax.f32 %v376_v5, %v265_v44 }
  0xc2   : > { %v431_v41 = vsel %vm403_vm10, %v430_v38, %v369_v39 }
  0xc3   : > { %v432_v42 = vsel %vm405_vm11, %v431_v41, %v372_v34 }
  0xc4   : > { %434 = vrot.lane.b32.xlu1 %v432_v42, %s736_s16 }
  0xc5   : > { %v259_v45 = vpop.xlane.xlu0 %258 }
  0xc6   : > { %v387_v46 = vmax.f32 %v386_v43, %v259_v45  ;;  %v374_v0 = vmax.f32 %v373_v37, %v259_v45 }
  0xc8   : > { %v314_v52 = vpop.xlane.xlu2 %313 }
  0xc9   : > { %v262_v47 = vpop.xlane.xlu1 %261 }
  0xca   : > { %v388_v48 = vmax.f32 %v387_v46, %v262_v47  ;;  %v375_v6 = vmax.f32 %v374_v0, %v262_v47 }
  0xcc   : > { %v389_v49 = vmax.f32 %v388_v48, %v265_v44 }
  0xcd   : > { %v268_v50 = vpop.xlane.xlu0 %267 }
  0xce   : > { %v390_v51 = vmax.f32 %v389_v49, %v268_v50  ;;  %v378_v10 = vmax.f32 %v377_v8, %v268_v50 }
  0xd1   : > { %v311_v53 = vpop.xlane.xlu1 %310 }
  0xd2   : > { %v379_v54 = vmax.f32 %v311_v53, %v314_v52  ;;  %v391_v55 = vmax.f32 %v390_v51, %v311_v53 }
  0xd4   : > { %v380_v56 = vmax.f32 %v379_v54, %v363_v28  ;;  %v392_v57 = vmax.f32 %v391_v55, %v314_v52 }
  0xd5   : > { %v317_v58 = vpop.xlane.xlu0 %316 }
  0xd6   : > { %v381_v59 = vmax.f32 %v380_v56, %v366_v31  ;;  %v382_v60 = vmax.f32 %v317_v58, %v320_v33  ;;  %v393_v61 = vmax.f32 %v392_v57, %v317_v58 }
  0xd8   : > { %v383_v62 = vmax.f32 %v382_v60, %v369_v39  ;;  %v394_v63 = vmax.f32 %v393_v61, %v320_v33 }
  0xda   : > { %v384_v1 = vmax.f32 %v383_v62, %v372_v34  ;;  %v395_v2 = vmax.f32 %v394_v63, %v363_v28 }
  0xdc   : > { %v396_v3 = vmax.f32 %v395_v2, %v366_v31 }
  0xde   : > { %v397_v7 = vmax.f32 %v396_v3, %v369_v39 }
  0xe0   : > { %v398_v9 = vmax.f32 %v397_v7, %v372_v34 }
  0xe2   : > { %v400_v11 = vsel %vm399_vm8, %v398_v9, %v375_v6  ;;  %vm439_vm8 = vcmask 166912  }
  0xe3   : > { %v402_v12 = vsel %vm401_vm9, %v400_v11, %v378_v10 }
  0xe4   : > { %v404_v13 = vsel %vm403_vm10, %v402_v12, %v381_v59 }
  0xe5   : > { %v406_v14 = vsel %vm405_vm11, %v404_v13, %v384_v1 }
  0xe6   : > { %v408_v15 = vsel %vm407_vm12, %v406_v14, %v204_v29 }
  0xe7   : > { %v410_v16 = vsel %vm409_vm13, %v408_v15, %v208_v32 }
  0xe8   : > { %v412_v17 = vsel %vm411_vm14, %v410_v16, %v212_v30 }
  0xe9   : > { %v414_v18 = vsel %vm413_vm15, %v412_v17, %v216_v35 }
  0xea   : > { %v416_v19 = vsel %vm415_vm0, %v414_v18, %v259_v45 }
  0xeb   : > { %v418_v20 = vsel %vm417_vm1, %v416_v19, %v262_v47 }
  0xec   : > { %v420_v21 = vsel %vm419_vm2, %v418_v20, %v265_v44 }
  0xed   : > { %v422_v22 = vsel %vm421_vm3, %v420_v21, %v268_v50 }
  0xee   : > { %v424_v23 = vsel %vm423_vm4, %v422_v22, %v311_v53 }
  0xef   : > { %v426_v24 = vsel %vm425_vm5, %v424_v23, %v314_v52 }
  0xf0   : > { %v428_v25 = vsel %vm427_vm6, %v426_v24, %v317_v58 }
 0x136   : > { %v435_v26 = vpop.permute.xlu1 %434 }
 0x137   : > { %v438_v4 = vsel %vm437_vm7, %v428_v25, %v435_v26 }
 0x138   : > { %440 = vst.msk [vmem:[%s155_s25] sm:$0xf] %vm439_vm8, %v438_v4 }
 0x139   : > { %677 = shalt.err (!%p674_p13)
}
 0x13a   : > { %557 = dma.vmem_to_hbm [thread:$0]  (%p798_p9), %s456_s26, 64, %s458_s27, %s442_s9  }
 0x13b PF: > { %s469_s5 = sand.u32 1, %s712_s6   ;;  %p564_p0 = pnand %p543_p12, %p805_p11 }
 0x13c   : > { %s470_s13 = scalar_lea.sflag [#allocation4], %s469_s5 }
 0x13d   : > { %p565_p1 = pneg %p564_p0 }
 0x13f   : > { %707 = dma.done.wait (%p565_p1), %s470_s13, 64  }
 0x140   : > { %709 = vsyncadd (%p565_p1), %s470_s13, 4294967232  ;;  %s17_s11 = sadd.s32 1, %s732_s11   ;;  %s950_s6 = smov %s716_s7 }
 0x141   : > { %p14_p2 = scmp.ge.s32.totalorder %s17_s11, 4   ;;  %s951_s7 = smov %s720_s8 }
 0x142   : > { %s952_s8 = smov %s803_s20  ;;  %s953_s9 = smov %s728_s10 }
 0x143   : > { %s954_s10 = smov %s956_s14  ;;  %16 = sbr.rel (!%p14_p2) target bundleno = 6 (0x6), region = 69 }
 0x148   :  { %476 = vsyncpa [#allocation3], 1 }
 0x149   :  { %478 = vsyncpa [#allocation3 + $0x1], 1 }
 0x14a   :  { %479 = vsyncpa [#allocation4], 1 }
 0x14b   :  { %481 = vsyncpa [#allocation4 + $0x1], 1 }

</bundles_post_ra>
